<compile_context>
chip_gen: v6e
topology: v6e:2x2x1
jax: 0.10.0
libtpu: 0.0.40
codegen_flags: <defaults>
</compile_context>

<pallas_src>
import functools

import jax
import jax.numpy as jnp
from jax.experimental import pallas as pl
from jax.experimental.pallas import tpu as pltpu

_LANE = 128
_SUBLANE = 8

# bf16 storage for weights/activations/outputs; f32 accumulation + FiLM math.
WEIGHT_DTYPE = jnp.bfloat16
ACT_DTYPE = jnp.bfloat16
OUT_DTYPE = jnp.bfloat16


def _round_up(x, m):
    return ((x + m - 1) // m) * m


# ----------------------------- Pallas kernel --------------------------------
def _film_classifier_kernel(
    a_ref,    # (Bt, Dap)     aasist features, lane-padded, ACT_DTYPE
    s_ref,    # (Bt, Ds)      ser features (condition), ACT_DTYPE
    wf_ref,   # (Ds, 2*Dap)   fused [gamma | beta] FiLM weight, WEIGHT_DTYPE
    bf_ref,   # (1, 2*Dap)    fused [gamma | beta] FiLM bias, f32
    w1_ref,   # (Dap, Hp)     classifier layer 1 weight (zero-padded), WEIGHT_DTYPE
    w2_ref,   # (Hp, Cp)      classifier layer 2 weight (zero-padded), WEIGHT_DTYPE
    b12_ref,  # (2, Wp)       packed biases: row 0 = b1 (Hp), row 1 = b2 (Cp), f32
    mod_ref,  # out: (Bt, Dap) modulated features, OUT_DTYPE
    out_ref,  # out: (Bt, Cp)  logits, OUT_DTYPE
):
    dap = a_ref.shape[1]
    hp = w1_ref.shape[1]
    cp = w2_ref.shape[1]

    a = a_ref[...]
    s = s_ref[...]

    # Fused FiLM projection: one (Ds x 2*Dap) GEMM, f32 accumulation.
    gb = jnp.dot(s.astype(wf_ref.dtype), wf_ref[...],
                 preferred_element_type=jnp.float32) + bf_ref[...]
    gamma = gb[:, :dap]          # static, 128-aligned split
    beta = gb[:, dap:]

    # FiLM elementwise math in f32 (VPU; v5e has no bf16 VALU path).
    mod = a.astype(jnp.float32) * gamma + beta

    b12 = b12_ref[...]
    b1 = b12[0:1, :hp]
    b2 = b12[1:2, :cp]

    # classifier: Linear(Dap -> Hp) -> ReLU -> Linear(Hp -> Cp), f32 accumulate.
    mod_lo = mod.astype(w1_ref.dtype)
    h = jnp.dot(mod_lo, w1_ref[...], preferred_element_type=jnp.float32) + b1
    h = jnp.maximum(h, 0.0)
    logits = jnp.dot(h.astype(w2_ref.dtype), w2_ref[...],
                     preferred_element_type=jnp.float32) + b2

    mod_ref[...] = mod.astype(mod_ref.dtype)
    out_ref[...] = logits.astype(out_ref.dtype)


def film_classifier(aasist_feat_p, ser_feat, packed, *, feature_dim, n_classes=2,
                    batch_tile=512, slice_outputs=True):
    """Fused FiLM + classifier head as a single batch-tiled Pallas call.

    aasist_feat_p : (B, Dap) features already lane-padded (zeros in pad lanes).
    ser_feat      : (B, Ds)  condition features.
    """
    B, Dap_in = aasist_feat_p.shape
    Ds = ser_feat.shape[1]

    w_film = packed["w_film"]
    b_film = packed["b_film"]
    w1 = packed["w1"]
    w2 = packed["w2"]
    b12 = packed["b12"]

    Dap = w_film.shape[1] // 2   # padded feature dim (multiple of 128)
    Hp = w1.shape[1]             # padded hidden dim
    Cp = w2.shape[1]             # padded class dim
    assert Dap_in == Dap, "backbone must emit lane-padded aasist features"

    # Batch tile: big MXU-friendly tiles (per-step grid overhead ~0.35us dominates
    # small tiles), but keep >= 2 grid steps for medium/large batches so both v7x
    # TensorCores are used under dimension_semantics=("parallel",).
    Bt = min(batch_tile, _round_up(B, _SUBLANE))
    if B > 2 * _LANE and pl.cdiv(B, Bt) < 2:
        Bt = _round_up(pl.cdiv(B, 2), 256 if B >= 512 else _SUBLANE)
    grid = (pl.cdiv(B, Bt),)     # uneven last block handled by masked boundary stores

    mod_p, logits_p = pl.pallas_call(
        _film_classifier_kernel,
        out_shape=(
            jax.ShapeDtypeStruct((B, Dap), OUT_DTYPE),
            jax.ShapeDtypeStruct((B, Cp), OUT_DTYPE),
        ),
        grid_spec=pl.GridSpec(
            grid=grid,
            in_specs=[
                pl.BlockSpec((Bt, Dap), lambda i: (i, 0)),        # activations: tiled
                pl.BlockSpec((Bt, Ds), lambda i: (i, 0)),
                pl.BlockSpec((Ds, 2 * Dap), lambda i: (0, 0)),    # weights: VMEM-resident
                pl.BlockSpec((1, 2 * Dap), lambda i: (0, 0)),
                pl.BlockSpec((Dap, Hp), lambda i: (0, 0)),
                pl.BlockSpec((Hp, Cp), lambda i: (0, 0)),
                pl.BlockSpec((2, b12.shape[1]), lambda i: (0, 0)),
            ],
            out_specs=(
                pl.BlockSpec((Bt, Dap), lambda i: (i, 0)),
                pl.BlockSpec((Bt, Cp), lambda i: (i, 0)),
            ),
        ),
        compiler_params=pltpu.CompilerParams(
            dimension_semantics=("parallel",),
        ),
    )(aasist_feat_p, ser_feat, w_film, b_film, w1, w2, b12)

    if not slice_outputs:
        # Hand the lane-dense padded slabs to a fused consumer (avoids HBM copies).
        return mod_p, logits_p
    # Module API contract: (B, feature_dim) modulated features + (B, n_classes) logits.
    return mod_p[:, :feature_dim], logits_p[:, :n_classes]


# ------------------------- deterministic parameters --------------------------
def _linear_init(key, fan_in, fan_out):
    """Mimic torch.nn.Linear default init: U(-1/sqrt(fan_in), 1/sqrt(fan_in)).

    Weight is stored (in, out) so the kernel computes x @ W + b.
    """
    kw, kb = jax.random.split(key)
    bound = 1.0 / jnp.sqrt(jnp.float32(fan_in))
    w = jax.random.uniform(kw, (fan_in, fan_out), jnp.float32, -bound, bound)
    b = jax.random.uniform(kb, (1, fan_out), jnp.float32, -bound, bound)
    return w, b


def init_raw_params(key, aasist_feat_dim, ser_feat_dim, hidden=64, n_classes=2):
    keys = jax.random.split(key, 4)
    gw, gb = _linear_init(keys[0], ser_feat_dim, aasist_feat_dim)   # FiLM gamma
    bw, bb = _linear_init(keys[1], ser_feat_dim, aasist_feat_dim)   # FiLM beta
    w1, b1 = _linear_init(keys[2], aasist_feat_dim, hidden)         # classifier[0]
    w2, b2 = _linear_init(keys[3], hidden, n_classes)               # classifier[2]
    return {
        "film_gamma_w": gw, "film_gamma_b": gb,
        "film_beta_w": bw, "film_beta_b": bb,
        "cls_w1": w1, "cls_b1": b1,
        "cls_w2": w2, "cls_b2": b2,
    }


def pack_params(raw, weight_dtype=WEIGHT_DTYPE):
    """Fuse/pad the raw PyTorch-layout params into the kernel's lane-dense layout."""
    gw, gb = raw["film_gamma_w"], raw["film_gamma_b"]
    bw, bb = raw["film_beta_w"], raw["film_beta_b"]
    w1, b1 = raw["cls_w1"], raw["cls_b1"]
    w2, b2 = raw["cls_w2"], raw["cls_b2"]

    Ds, Da = gw.shape
    H = w1.shape[1]
    C = w2.shape[1]
    Dap = _round_up(Da, _LANE)
    Hp = _round_up(H, _LANE)
    Cp = _round_up(C, _LANE)
    Wp = max(Hp, Cp)

    def pad2(m, rows, cols):
        return jnp.pad(m, ((0, rows - m.shape[0]), (0, cols - m.shape[1])))

    # Fused [gamma | beta] FiLM projection.
    w_film = jnp.concatenate([pad2(gw, Ds, Dap), pad2(bw, Ds, Dap)], axis=1)
    b_film = jnp.concatenate(
        [pad2(gb.reshape(1, -1), 1, Dap), pad2(bb.reshape(1, -1), 1, Dap)], axis=1)

    # Zero-padded classifier weights (padded lanes/rows contribute exactly 0).
    w1_p = pad2(w1, Dap, Hp)
    w2_p = pad2(w2, Hp, Cp)
    # Packed biases in a (2, max(Hp, Cp)) slab; kernel slices row 0 to Hp, row 1 to Cp.
    b12 = jnp.concatenate(
        [pad2(b1.reshape(1, -1), 1, Wp), pad2(b2.reshape(1, -1), 1, Wp)], axis=0)

    return {
        "w_film": w_film.astype(weight_dtype),
        "b_film": b_film.astype(jnp.float32),
        "w1": w1_p.astype(weight_dtype),
        "w2": w2_p.astype(weight_dtype),
        "b12": b12.astype(jnp.float32),
    }


# ----------------- synthetic backbone feature extraction (glue) --------------
def synthetic_backbones(x, key, aasist_feat_dim, ser_feat_dim, aasist_feat_dim_padded):
    """Deterministic stand-ins for self.aasist(x) and self.ser(mel(x)).

    x: (B, T) raw waveform. Frames the signal, mean-pools, and projects with fixed
    random matrices. Emits the aasist features already at the lane-padded width
    (pad lanes are exactly zero: the projection matrix columns are zero) and in
    bf16, so the Pallas head needs no wrapper-side pad/cast HBM round trips.
    """
    B, T = x.shape
    n_frames = 16
    frames = x.reshape(B, n_frames, T // n_frames)
    pooled = jnp.mean(frames, axis=-1)  # (B, n_frames)

    ka, ks = jax.random.split(key)
    proj_a = jax.random.normal(ka, (n_frames, aasist_feat_dim), jnp.float32) * 0.1
    proj_a_p = jnp.pad(
        proj_a, ((0, 0), (0, aasist_feat_dim_padded - aasist_feat_dim)))
    proj_s = jax.random.normal(ks, (n_frames, ser_feat_dim), jnp.float32) * 0.1

    aasist_feat_p = jnp.tanh(pooled @ proj_a_p).astype(ACT_DTYPE)  # (B, Dap)
    ser_feat = jnp.tanh(pooled @ proj_s).astype(ACT_DTYPE)         # (B, Ds)
    return aasist_feat_p, ser_feat


# --------------------------------- forward -----------------------------------
@functools.partial(
    jax.jit, static_argnames=("aasist_feat_dim", "ser_feat_dim", "n_classes"))
def aasist_with_emotion_forward(x, packed_params, feat_key,
                                aasist_feat_dim, ser_feat_dim, n_classes=2):
    dap = packed_params["w_film"].shape[1] // 2
    aasist_feat_p, ser_feat = synthetic_backbones(
        x, feat_key, aasist_feat_dim, ser_feat_dim, dap)
    modulated, logits = film_classifier(
        aasist_feat_p, ser_feat, packed_params,
        feature_dim=aasist_feat_dim, n_classes=n_classes)
    return modulated, logits


# --------------------------------- reference ----------------------------------
def _bf16_round(x):
    return x.astype(jnp.bfloat16).astype(jnp.float32)


def _reference_head(a, s, raw):
    """Pure-JAX reference mimicking the kernel's bf16 operand rounding (f32 math)."""
    a = _bf16_round(a)
    s = _bf16_round(s)
    gamma = s @ _bf16_round(raw["film_gamma_w"]) + raw["film_gamma_b"]
    beta = s @ _bf16_round(raw["film_beta_w"]) + raw["film_beta_b"]
    mod = a * gamma + beta
    h = jnp.maximum(_bf16_round(mod) @ _bf16_round(raw["cls_w1"]) + raw["cls_b1"], 0.0)
    logits = _bf16_round(h) @ _bf16_round(raw["cls_w2"]) + raw["cls_b2"]
    return mod, logits


# ----------------------------------- main ------------------------------------
if __name__ == "__main__":
    # module-consistent shapes:
    #   gat_dims[1] = 32  ->  aasist_feat_dim = 5 * 32 = 160
    #   ser_feat_dim = 256 (fixed by the module)
    B = 2
    T = 4096          # short raw waveform
    GAT_DIM1 = 32
    AASIST_FEAT_DIM = 5 * GAT_DIM1
    SER_FEAT_DIM = 256

    root = jax.random.PRNGKey(0)
    k_x, k_params, k_feat = jax.random.split(root, 3)

    x = jax.random.normal(k_x, (B, T), jnp.float32)
    raw = init_raw_params(k_params, AASIST_FEAT_DIM, SER_FEAT_DIM)
    packed = pack_params(raw)
    DAP = packed["w_film"].shape[1] // 2

    # --- small-batch path (single grid step, 8-row tile) ---
    modulated, logits = aasist_with_emotion_forward(
        x, packed, k_feat, AASIST_FEAT_DIM, SER_FEAT_DIM)
    jax.block_until_ready((modulated, logits))

    a_p, s_ref = synthetic_backbones(x, k_feat, AASIST_FEAT_DIM, SER_FEAT_DIM, DAP)
    mod_ref, out_ref = _reference_head(a_p[:, :AASIST_FEAT_DIM], s_ref, raw)

    assert modulated.shape == (B, AASIST_FEAT_DIM)
    assert logits.shape == (B, 2)
    # bf16 storage -> loosened tolerances vs. the f32-math reference.
    assert jnp.allclose(modulated.astype(jnp.float32), mod_ref, atol=2e-2, rtol=2e-2)
    assert jnp.allclose(logits.astype(jnp.float32), out_ref, atol=2e-2, rtol=2e-2)

    # --- batch-tiled path: >= 2 grid steps (v7x megacore), uneven last block ---
    B2 = 520
    x2 = jax.random.normal(jax.random.PRNGKey(1), (B2, T), jnp.float32)
    mod2, log2 = aasist_with_emotion_forward(
        x2, packed, k_feat, AASIST_FEAT_DIM, SER_FEAT_DIM)
    jax.block_until_ready((mod2, log2))

    a2_p, s2 = synthetic_backbones(x2, k_feat, AASIST_FEAT_DIM, SER_FEAT_DIM, DAP)
    mod2_ref, out2_ref = _reference_head(a2_p[:, :AASIST_FEAT_DIM], s2, raw)

    assert mod2.shape == (B2, AASIST_FEAT_DIM)
    assert log2.shape == (B2, 2)
    assert jnp.allclose(mod2.astype(jnp.float32), mod2_ref, atol=2e-2, rtol=2e-2)
    assert jnp.allclose(log2.astype(jnp.float32), out2_ref, atol=2e-2, rtol=2e-2)

    print("KERNEL_OK")
</pallas_src>

<mosaic_0001>
module attributes {stable_mosaic.version = 11 : i64} {
  func.func @_film_classifier_kernel(%arg0: i32, %arg1: memref<8x256xbf16, #tpu.memory_space<vmem>>, %arg2: memref<8x256xbf16, #tpu.memory_space<vmem>>, %arg3: memref<256x512xbf16, #tpu.memory_space<vmem>>, %arg4: memref<1x512xf32, #tpu.memory_space<vmem>>, %arg5: memref<256x128xbf16, #tpu.memory_space<vmem>>, %arg6: memref<128x128xbf16, #tpu.memory_space<vmem>>, %arg7: memref<2x128xf32, #tpu.memory_space<vmem>>, %arg8: memref<8x256xbf16, #tpu.memory_space<vmem>>, %arg9: memref<8x128xbf16, #tpu.memory_space<vmem>>) attributes {dimension_semantics = [#tpu.dimension_semantics<parallel>], iteration_bounds = array<i64: 1>, scalar_prefetch = 0 : i64, scratch_operands = 0 : i64, tpu.core_type = #tpu.core_type<tc>, window_params = [{transform_indices = @transform_0, window_bounds = array<i64: 8, 256>}, {transform_indices = @transform_1, window_bounds = array<i64: 8, 256>}, {pipeline_mode = #tpu.pipeline_mode<synchronous>, transform_indices = @transform_2, window_bounds = array<i64: 256, 512>}, {pipeline_mode = #tpu.pipeline_mode<synchronous>, transform_indices = @transform_3, window_bounds = array<i64: 1, 512>}, {pipeline_mode = #tpu.pipeline_mode<synchronous>, transform_indices = @transform_4, window_bounds = array<i64: 256, 128>}, {pipeline_mode = #tpu.pipeline_mode<synchronous>, transform_indices = @transform_5, window_bounds = array<i64: 128, 128>}, {pipeline_mode = #tpu.pipeline_mode<synchronous>, transform_indices = @transform_6, window_bounds = array<i64: 2, 128>}, {transform_indices = @transform_7, window_bounds = array<i64: 8, 256>}, {transform_indices = @transform_8, window_bounds = array<i64: 8, 128>}]} {
    %c0 = arith.constant 0 : index
    %c0_0 = arith.constant 0 : index
    %0 = vector.load %arg1[%c0, %c0_0] : memref<8x256xbf16, #tpu.memory_space<vmem>>, vector<8x256xbf16>
    %c0_1 = arith.constant 0 : index
    %c0_2 = arith.constant 0 : index
    %1 = vector.load %arg2[%c0_1, %c0_2] : memref<8x256xbf16, #tpu.memory_space<vmem>>, vector<8x256xbf16>
    %c0_3 = arith.constant 0 : index
    %c0_4 = arith.constant 0 : index
    %2 = vector.load %arg3[%c0_3, %c0_4] : memref<256x512xbf16, #tpu.memory_space<vmem>>, vector<256x512xbf16>
    %cst = arith.constant dense<0.000000e+00> : vector<8x512xf32>
    %3 = tpu.matmul %1, %2, %cst {dimension_numbers = #tpu.dot_dimension_numbers<[1], [0], [0], [1], [0, 0, 1, 1], [], []>} : vector<8x256xbf16>, vector<256x512xbf16>, vector<8x512xf32> -> vector<8x512xf32>
    %c0_5 = arith.constant 0 : index
    %c0_6 = arith.constant 0 : index
    %4 = vector.load %arg4[%c0_5, %c0_6] : memref<1x512xf32, #tpu.memory_space<vmem>>, vector<1x512xf32>
    %5 = vector.broadcast %4 : vector<1x512xf32> to vector<8x512xf32>
    %6 = arith.addf %3, %5 : vector<8x512xf32>
    %7 = vector.extract_strided_slice %6 {offsets = [0, 0], sizes = [8, 256], strides = [1, 1]} : vector<8x512xf32> to vector<8x256xf32>
    %8 = vector.extract_strided_slice %6 {offsets = [0, 256], sizes = [8, 256], strides = [1, 1]} : vector<8x512xf32> to vector<8x256xf32>
    %9 = arith.extf %0 : vector<8x256xbf16> to vector<8x256xf32>
    %10 = arith.mulf %9, %7 : vector<8x256xf32>
    %11 = arith.addf %10, %8 : vector<8x256xf32>
    %c0_7 = arith.constant 0 : index
    %c0_8 = arith.constant 0 : index
    %12 = vector.load %arg7[%c0_7, %c0_8] : memref<2x128xf32, #tpu.memory_space<vmem>>, vector<2x128xf32>
    %13 = vector.extract_strided_slice %12 {offsets = [0, 0], sizes = [1, 128], strides = [1, 1]} : vector<2x128xf32> to vector<1x128xf32>
    %14 = vector.extract_strided_slice %12 {offsets = [1, 0], sizes = [1, 128], strides = [1, 1]} : vector<2x128xf32> to vector<1x128xf32>
    %15 = arith.truncf %11 : vector<8x256xf32> to vector<8x256xbf16>
    %c0_9 = arith.constant 0 : index
    %c0_10 = arith.constant 0 : index
    %16 = vector.load %arg5[%c0_9, %c0_10] : memref<256x128xbf16, #tpu.memory_space<vmem>>, vector<256x128xbf16>
    %cst_11 = arith.constant dense<0.000000e+00> : vector<8x128xf32>
    %17 = tpu.matmul %15, %16, %cst_11 {dimension_numbers = #tpu.dot_dimension_numbers<[1], [0], [0], [1], [0, 0, 1, 1], [], []>} : vector<8x256xbf16>, vector<256x128xbf16>, vector<8x128xf32> -> vector<8x128xf32>
    %18 = vector.broadcast %13 : vector<1x128xf32> to vector<8x128xf32>
    %19 = arith.addf %17, %18 : vector<8x128xf32>
    %cst_12 = arith.constant 0.000000e+00 : f32
    %20 = vector.broadcast %cst_12 : f32 to vector<8x128xf32>
    %21 = arith.maximumf %19, %20 : vector<8x128xf32>
    %22 = arith.truncf %21 : vector<8x128xf32> to vector<8x128xbf16>
    %c0_13 = arith.constant 0 : index
    %c0_14 = arith.constant 0 : index
    %23 = vector.load %arg6[%c0_13, %c0_14] : memref<128x128xbf16, #tpu.memory_space<vmem>>, vector<128x128xbf16>
    %cst_15 = arith.constant dense<0.000000e+00> : vector<8x128xf32>
    %24 = tpu.matmul %22, %23, %cst_15 {dimension_numbers = #tpu.dot_dimension_numbers<[1], [0], [0], [1], [0, 0, 1, 1], [], []>} : vector<8x128xbf16>, vector<128x128xbf16>, vector<8x128xf32> -> vector<8x128xf32>
    %25 = vector.broadcast %14 : vector<1x128xf32> to vector<8x128xf32>
    %26 = arith.addf %24, %25 : vector<8x128xf32>
    %27 = arith.truncf %11 : vector<8x256xf32> to vector<8x256xbf16>
    %c0_16 = arith.constant 0 : index
    %c0_17 = arith.constant 0 : index
    %28 = vector.load %arg8[%c0_16, %c0_17] : memref<8x256xbf16, #tpu.memory_space<vmem>>, vector<8x256xbf16>
    tpu.vector_store %arg8[%c0_16, %c0_17], %27 {strides = array<i32>} : memref<8x256xbf16, #tpu.memory_space<vmem>>, vector<8x256xbf16>,
    %29 = arith.truncf %26 : vector<8x128xf32> to vector<8x128xbf16>
    %c0_18 = arith.constant 0 : index
    %c0_19 = arith.constant 0 : index
    %30 = vector.load %arg9[%c0_18, %c0_19] : memref<8x128xbf16, #tpu.memory_space<vmem>>, vector<8x128xbf16>
    tpu.vector_store %arg9[%c0_18, %c0_19], %29 {strides = array<i32>} : memref<8x128xbf16, #tpu.memory_space<vmem>>, vector<8x128xbf16>,
    return
  }
  func.func @transform_0(%arg0: i32) -> (i32, i32) {
    %c0_i32 = arith.constant 0 : i32
    %c0_i32_0 = arith.constant 0 : i32
    return %arg0, %c0_i32 : i32, i32
  }
  func.func @transform_1(%arg0: i32) -> (i32, i32) {
    %c0_i32 = arith.constant 0 : i32
    %c0_i32_0 = arith.constant 0 : i32
    return %arg0, %c0_i32 : i32, i32
  }
  func.func @transform_2(%arg0: i32) -> (i32, i32) {
    %c0_i32 = arith.constant 0 : i32
    %c0_i32_0 = arith.constant 0 : i32
    %c0_i32_1 = arith.constant 0 : i32
    return %c0_i32, %c0_i32_0 : i32, i32
  }
  func.func @transform_3(%arg0: i32) -> (i32, i32) {
    %c0_i32 = arith.constant 0 : i32
    %c0_i32_0 = arith.constant 0 : i32
    %c0_i32_1 = arith.constant 0 : i32
    return %c0_i32, %c0_i32_0 : i32, i32
  }
  func.func @transform_4(%arg0: i32) -> (i32, i32) {
    %c0_i32 = arith.constant 0 : i32
    %c0_i32_0 = arith.constant 0 : i32
    %c0_i32_1 = arith.constant 0 : i32
    return %c0_i32, %c0_i32_0 : i32, i32
  }
  func.func @transform_5(%arg0: i32) -> (i32, i32) {
    %c0_i32 = arith.constant 0 : i32
    %c0_i32_0 = arith.constant 0 : i32
    %c0_i32_1 = arith.constant 0 : i32
    return %c0_i32, %c0_i32_0 : i32, i32
  }
  func.func @transform_6(%arg0: i32) -> (i32, i32) {
    %c0_i32 = arith.constant 0 : i32
    %c0_i32_0 = arith.constant 0 : i32
    %c0_i32_1 = arith.constant 0 : i32
    return %c0_i32, %c0_i32_0 : i32, i32
  }
  func.func @transform_7(%arg0: i32) -> (i32, i32) {
    %c0_i32 = arith.constant 0 : i32
    %c0_i32_0 = arith.constant 0 : i32
    return %arg0, %c0_i32 : i32, i32
  }
  func.func @transform_8(%arg0: i32) -> (i32, i32) {
    %c0_i32 = arith.constant 0 : i32
    %c0_i32_0 = arith.constant 0 : i32
    return %arg0, %c0_i32 : i32, i32
  }
}

</mosaic_0001>

<bundles_post_ra>
// kernel: aasist_with_emotion_forward.1
= control target key start
LH: loop header
LB: loop body
LE: loop exit
PB: predicated region body
PF: predicated region fallthrough
CT: control target
= control target key end

     0   :  { %14 = vsyncpa [#allocation3], 0  ;;  %s1745_s0 = inlined_call_operand.vmem [shape: bf16[2,256], index: 0, kind: input, shape index: {}]   ;;  %s1746_s1 = inlined_call_operand.vmem [shape: bf16[2,256], index: 1, kind: input, shape index: {}]   ;;  %s1747_s2 = inlined_call_operand.vmem [shape: bf16[256,512], index: 2, kind: input, shape index: {}]   ;;  %s1748_s3 = inlined_call_operand.vmem [shape: f32[1,512], index: 3, kind: input, shape index: {}]   ;;  %s1749_s4 = inlined_call_operand.vmem [shape: bf16[256,128], index: 4, kind: input, shape index: {}]   ;;  %s1750_s5 = inlined_call_operand.vmem [shape: bf16[128,128], index: 5, kind: input, shape index: {}]   ;;  %s1751_s6 = inlined_call_operand.vmem [shape: f32[2,128], index: 6, kind: input, shape index: {}]   ;;  %s1752_s7 = inlined_call_operand.hbm [shape: bf16[2,256], index: 7, kind: output, shape index: {0}]   ;;  %s1753_s8 = inlined_call_operand.hbm [shape: bf16[2,128], index: 8, kind: output, shape index: {1}]  }
   0x1   :  { %15 = vsyncpa [#allocation5], 0  ;;  %v1189_v0 = vld [vmem:[%s1747_s2 + $0xe4] ss:$16 sps:$4 sm:$0xff]   ;;  %v1191_v1 = vld [vmem:[%s1747_s2 + $0xec] ss:$16 sps:$4 sm:$0xff]   ;;  %v105_v38 = vlaneseq }
   0x2   :  { %v1193_v2 = vld [vmem:[%s1747_s2 + $0xe0] ss:$16 sps:$4 sm:$0xff]   ;;  %v1194_v3 = vld [vmem:[%s1747_s2 + $0xe8] ss:$16 sps:$4 sm:$0xff]   ;;  %483 = vmatprep.subr.bf16.mxu0 %v1189_v0  ;;  %v1195_v4 = vld [vmem:[%s1747_s2 + $0xc4] ss:$16 sps:$4 sm:$0xff]   ;;  %524 = vmatprep.subr.bf16.mxu1 %v1191_v1 }
   0x3   :  { %484 = vmatpush1.bf16.msra.mxu0 %v1193_v2  ;;  %v1197_v5 = vld [vmem:[%s1747_s2 + $0xcc] ss:$16 sps:$4 sm:$0xff]   ;;  %525 = vmatpush1.bf16.msra.mxu1 %v1194_v3  ;;  %v1199_v6 = vld [vmem:[%s1747_s2 + $0xc0] ss:$16 sps:$4 sm:$0xff]   ;;  %v1200_v7 = vld [vmem:[%s1747_s2 + $0xc8] ss:$16 sps:$4 sm:$0xff]  }
   0x4   :  { %485 = vmatprep.subr.bf16.mxu0 %v1195_v4  ;;  %526 = vmatprep.subr.bf16.mxu1 %v1197_v5  ;;  %v1201_v8 = vld [vmem:[%s1747_s2 + $0xa4] ss:$16 sps:$4 sm:$0xff]   ;;  %v1203_v9 = vld [vmem:[%s1747_s2 + $0xac] ss:$16 sps:$4 sm:$0xff]   ;;  %v1205_v10 = vld [vmem:[%s1747_s2 + $0xa0] ss:$16 sps:$4 sm:$0xff]  }
   0x5   :  { %v1206_v11 = vld [vmem:[%s1747_s2 + $0xa8] ss:$16 sps:$4 sm:$0xff]   ;;  %v1207_v12 = vld [vmem:[%s1747_s2 + $0x84] ss:$16 sps:$4 sm:$0xff]   ;;  %v1209_v13 = vld [vmem:[%s1747_s2 + $0x8c] ss:$16 sps:$4 sm:$0xff]  }
   0x6   :  { %v1211_v14 = vld [vmem:[%s1747_s2 + $0x80] ss:$16 sps:$4 sm:$0xff]   ;;  %v1212_v15 = vld [vmem:[%s1747_s2 + $0x88] ss:$16 sps:$4 sm:$0xff]   ;;  %v1213_v16 = vld [vmem:[%s1747_s2 + $0x64] ss:$16 sps:$4 sm:$0xff]  }
   0x7   :  { %486 = vmatpush1.bf16.msra.mxu0 %v1199_v6  ;;  %527 = vmatpush1.bf16.msra.mxu1 %v1200_v7  ;;  %v1215_v17 = vld [vmem:[%s1747_s2 + $0x6c] ss:$16 sps:$4 sm:$0xff]   ;;  %v1217_v18 = vld [vmem:[%s1747_s2 + $0x60] ss:$16 sps:$4 sm:$0xff]   ;;  %v1218_v19 = vld [vmem:[%s1747_s2 + $0x68] ss:$16 sps:$4 sm:$0xff]  }
   0x8   :  { %487 = vmatprep.subr.bf16.mxu0 %v1201_v8  ;;  %528 = vmatprep.subr.bf16.mxu1 %v1203_v9  ;;  %v1219_v20 = vld [vmem:[%s1747_s2 + $0x44] ss:$16 sps:$4 sm:$0xff]   ;;  %v1221_v21 = vld [vmem:[%s1747_s2 + $0x4c] ss:$16 sps:$4 sm:$0xff]   ;;  %v1223_v22 = vld [vmem:[%s1747_s2 + $0x40] ss:$16 sps:$4 sm:$0xff]  }
   0x9   :  { %v1224_v23 = vld [vmem:[%s1747_s2 + $0x48] ss:$16 sps:$4 sm:$0xff]   ;;  %v1225_v24 = vld [vmem:[%s1747_s2 + $0x24] ss:$16 sps:$4 sm:$0xff]   ;;  %v1227_v25 = vld [vmem:[%s1747_s2 + $0x2c] ss:$16 sps:$4 sm:$0xff]  }
   0xa   :  { %v1229_v26 = vld [vmem:[%s1747_s2 + $0x20] ss:$16 sps:$4 sm:$0xff]   ;;  %v1230_v27 = vld [vmem:[%s1747_s2 + $0x28] ss:$16 sps:$4 sm:$0xff]   ;;  %v1231_v28 = vld [vmem:[%s1747_s2 + $0x4] ss:$16 sps:$4 sm:$0xff]  }
   0xb   :  { %488 = vmatpush1.bf16.msra.mxu0 %v1205_v10  ;;  %529 = vmatpush1.bf16.msra.mxu1 %v1206_v11  ;;  %v1233_v29 = vld [vmem:[%s1747_s2 + $0xc] ss:$16 sps:$4 sm:$0xff]   ;;  %v1235_v30 = vld [vmem:[%s1747_s2] ss:$16 sps:$4 sm:$0xff]   ;;  %v1236_v31 = vld [vmem:[%s1747_s2 + $0x8] ss:$16 sps:$4 sm:$0xff]  }
   0xc   :  { %489 = vmatprep.subr.bf16.mxu0 %v1207_v12  ;;  %530 = vmatprep.subr.bf16.mxu1 %v1209_v13  ;;  %v1237_v32 = vld [vmem:[%s1747_s2 + $0x1e4] ss:$16 sps:$4 sm:$0xff]   ;;  %v1239_v33 = vld [vmem:[%s1747_s2 + $0x1ec] ss:$16 sps:$4 sm:$0xff]   ;;  %v1241_v34 = vld [vmem:[%s1747_s2 + $0x1e0] ss:$16 sps:$4 sm:$0xff]  }
   0xd   :  { %v1242_v35 = vld [vmem:[%s1747_s2 + $0x1e8] ss:$16 sps:$4 sm:$0xff]   ;;  %v1243_v36 = vld [vmem:[%s1747_s2 + $0x1c4] ss:$16 sps:$4 sm:$0xff]   ;;  %v1245_v37 = vld [vmem:[%s1747_s2 + $0x1cc] ss:$16 sps:$4 sm:$0xff]  }
   0xe   :  { %v1353_v39 = vmov 1966171168   ;;  %v1247_v41 = vld [vmem:[%s1747_s2 + $0x1c0] ss:$16 sps:$4 sm:$0xff]   ;;  %v1248_v42 = vld [vmem:[%s1747_s2 + $0x1c8] ss:$16 sps:$4 sm:$0xff]  }
   0xf   :  { %490 = vmatpush1.bf16.msra.mxu0 %v1211_v14  ;;  %531 = vmatpush1.bf16.msra.mxu1 %v1212_v15  ;;  %v132_v40 = vunpack.c.l.s4 %v1353_v39  ;;  %v1249_v43 = vld [vmem:[%s1747_s2 + $0x1a4] ss:$16 sps:$4 sm:$0xff]   ;;  %v1251_v44 = vld [vmem:[%s1747_s2 + $0x1ac] ss:$16 sps:$4 sm:$0xff]   ;;  %v1534_v45 = vshrl.u32 %v105_v38, 7  ;;  %vm1356_vm0 = vmmov 0  }
  0x10   :  { %491 = vmatprep.subr.bf16.mxu0 %v1213_v16  ;;  %532 = vmatprep.subr.bf16.mxu1 %v1215_v17  ;;  %v1253_v47 = vld [vmem:[%s1747_s2 + $0x1a0] ss:$16 sps:$4 sm:$0xff]   ;;  %v1254_v48 = vld [vmem:[%s1747_s2 + $0x1a8] ss:$16 sps:$4 sm:$0xff]   ;;  %v1255_v49 = vld [vmem:[%s1747_s2 + $0x184] ss:$16 sps:$4 sm:$0xff]  }
  0x11   :  { %v133_v46 = vunpack.c.0.s8 %v132_v40  ;;  %v1257_v50 = vld [vmem:[%s1747_s2 + $0x18c] ss:$16 sps:$4 sm:$0xff]   ;;  %v1259_v51 = vld [vmem:[%s1747_s2 + $0x180] ss:$16 sps:$4 sm:$0xff]   ;;  %v1260_v53 = vld [vmem:[%s1747_s2 + $0x188] ss:$16 sps:$4 sm:$0xff]  }
  0x12   :  { %v1261_v54 = vld [vmem:[%s1747_s2 + $0x164] ss:$16 sps:$4 sm:$0xff]   ;;  %v35_v55 = vld [vmem:[%s1746_s1] sm:$0x3]  ;;  %v36_v56 = vld [vmem:[%s1746_s1 + $0x2] sm:$0x3] }
  0x13   :  { %492 = vmatpush1.bf16.msra.mxu0 %v1217_v18  ;;  %533 = vmatpush1.bf16.msra.mxu1 %v1218_v19  ;;  %v1552_v52 = vsub.s32 %v133_v46, %v1534_v45  ;;  %v37_v57 = vld [vmem:[%s1746_s1 + $0x4] sm:$0x3]  ;;  %v38_v58 = vld [vmem:[%s1746_s1 + $0x6] sm:$0x3]  ;;  %v129_v59 = vcombine.low %v35_v55, %v36_v56  ;;  %v1263_v60 = vld [vmem:[%s1747_s2 + $0x16c] ss:$16 sps:$4 sm:$0xff]  }
  0x14   :  { %493 = vmatprep.subr.bf16.mxu0 %v1219_v20  ;;  %534 = vmatprep.subr.bf16.mxu1 %v1221_v21  ;;  %v130_v61 = vcombine.low %v37_v57, %v38_v58  ;;  %v1265_v62 = vld [vmem:[%s1747_s2 + $0x160] ss:$16 sps:$4 sm:$0xff]   ;;  %v1266_v0 = vld [vmem:[%s1747_s2 + $0x168] ss:$16 sps:$4 sm:$0xff]   ;;  %v1267_v2 = vld [vmem:[%s1747_s2 + $0x144] ss:$16 sps:$4 sm:$0xff]  }
  0x15   :  { %v137_v63 = vrot.slane %v129_v59, %v1552_v52  ;;  %v1269_v3 = vld [vmem:[%s1747_s2 + $0x14c] ss:$16 sps:$4 sm:$0xff]   ;;  %v1271_v5 = vld [vmem:[%s1747_s2 + $0x140] ss:$16 sps:$4 sm:$0xff]   ;;  %v1272_v6 = vld [vmem:[%s1747_s2 + $0x148] ss:$16 sps:$4 sm:$0xff]  }
  0x16   :  { %v144_v1 = vrot.slane %v130_v61, %v1552_v52  ;;  %v1273_v7 = vld [vmem:[%s1747_s2 + $0x124] ss:$16 sps:$4 sm:$0xff]   ;;  %v1275_v9 = vld [vmem:[%s1747_s2 + $0x12c] ss:$16 sps:$4 sm:$0xff]   ;;  %v1277_v10 = vld [vmem:[%s1747_s2 + $0x120] ss:$16 sps:$4 sm:$0xff]  }
  0x17   :  { %494 = vmatpush1.bf16.msra.mxu0 %v1223_v22  ;;  %535 = vmatpush1.bf16.msra.mxu1 %v1224_v23  ;;  %v1278_v11 = vld [vmem:[%s1747_s2 + $0x128] ss:$16 sps:$4 sm:$0xff]   ;;  %v1279_v12 = vld [vmem:[%s1747_s2 + $0x104] ss:$16 sps:$4 sm:$0xff]   ;;  %v1281_v13 = vld [vmem:[%s1747_s2 + $0x10c] ss:$16 sps:$4 sm:$0xff]  }
  0x18   :  { %495 = vmatprep.subr.bf16.mxu0 %v1225_v24  ;;  %536 = vmatprep.subr.bf16.mxu1 %v1227_v25  ;;  %v146_v4 = vcombine.high %v137_v63, %v144_v1  ;;  %v1283_v14 = vld [vmem:[%s1747_s2 + $0x100] ss:$16 sps:$4 sm:$0xff]   ;;  %v1284_v15 = vld [vmem:[%s1747_s2 + $0x108] ss:$16 sps:$4 sm:$0xff]   ;;  %v145_v16 = vcombine.low %v137_v63, %v144_v1  ;;  %v115_v40 = vsub.s32 2, %v1534_v45 }
  0x19   :  { %v1285_v17 = vld [vmem:[%s1749_s4 + $0x78] sm:$0xff]   ;;  %v1287_v20 = vld [vmem:[%s1749_s4 + $0x70] sm:$0xff]   ;;  %v1289_v22 = vld [vmem:[%s1749_s4 + $0x68] sm:$0xff]  }
  0x1a   :  { %v160_v8 = vrot.slane %v146_v4, %v1552_v52  ;;  %v153_v18 = vrot.slane %v145_v16, %v1552_v52  ;;  %v1286_v19 = vld [vmem:[%s1749_s4 + $0x38] sm:$0xff]   ;;  %v1288_v21 = vld [vmem:[%s1749_s4 + $0x30] sm:$0xff]   ;;  %v1290_v23 = vld [vmem:[%s1749_s4 + $0x28] sm:$0xff]  }
  0x1b   :  { %496 = vmatpush1.bf16.msra.mxu0 %v1229_v26  ;;  %537 = vmatpush1.bf16.msra.mxu1 %v1230_v27  ;;  %v1291_v24 = vld [vmem:[%s1749_s4 + $0x60] sm:$0xff]   ;;  %v1293_v26 = vld [vmem:[%s1749_s4 + $0x58] sm:$0xff]  }
  0x1c   :  { %497 = vmatprep.subr.bf16.mxu0 %v1231_v28  ;;  %538 = vmatprep.subr.bf16.mxu1 %v1233_v29  ;;  %v1292_v25 = vld [vmem:[%s1749_s4 + $0x20] sm:$0xff]   ;;  %v1294_v27 = vld [vmem:[%s1749_s4 + $0x18] sm:$0xff]   ;;  %v1295_v28 = vld [vmem:[%s1749_s4 + $0x50] sm:$0xff]  }
  0x1d   :  { %515 = vmatprep.mubr.bf16.mxu0 %v160_v8  ;;  %556 = vmatprep.mubr.bf16.mxu1 %v160_v8  ;;  %v1296_v29 = vld [vmem:[%s1749_s4 + $0x10] sm:$0xff]   ;;  %v1304_v38 = vld [vmem:[%s1750_s5 + $0x20] sm:$0xff]   ;;  %v1305_v39 = vld [vmem:[%s1750_s5 + $0x18] sm:$0xff]  }
  0x1e   :  { %v103_v46 = vld [vmem:[%s1748_s3] sm:$0xf]  ;;  %v33_v58 = vld [vmem:[%s1745_s0 + $0x4] sm:$0x3]  ;;  %v34_v1 = vld [vmem:[%s1745_s0 + $0x6] sm:$0x3] }
  0x1f   :  { %498 = vmatpush1.bf16.msra.mxu0 %v1235_v30  ;;  %539 = vmatpush1.bf16.msra.mxu1 %v1236_v31  ;;  %v1297_v30 = vld [vmem:[%s1749_s4 + $0x48] sm:$0xff]   ;;  %v31_v57 = vld [vmem:[%s1745_s0] sm:$0x3] }
  0x20   :  { %499 = vmatprep.subr.bf16.mxu0 %v1237_v32  ;;  %540 = vmatprep.subr.bf16.mxu1 %v1239_v33  ;;  %v1298_v31 = vld [vmem:[%s1749_s4 + $0x8] sm:$0xff]   ;;  %v1299_v32 = vld [vmem:[%s1749_s4 + $0x40] sm:$0xff]   ;;  %v565_v4 = vunpack.c.l.bf16 %v31_v57 }
  0x21   :  { %v1300_v33 = vld [vmem:[%s1749_s4] sm:$0xff]  }
  0x23   :  { %500 = vmatpush2.bf16.msra.mxu0 %v1241_v34  ;;  %541 = vmatpush2.bf16.msra.mxu1 %v1242_v35  ;;  %v1301_v34 = vld [vmem:[%s1750_s5 + $0x38] sm:$0xff]   ;;  %v1354_v35 = vmov 0.0  }
  0x24   :  { %501 = vmatprep.subr.bf16.mxu0 %v1243_v36  ;;  %542 = vmatprep.subr.bf16.mxu1 %v1245_v37  ;;  %v1302_v36 = vld [vmem:[%s1750_s5 + $0x30] sm:$0xff]   ;;  %v1303_v37 = vld [vmem:[%s1750_s5 + $0x28] sm:$0xff]  }
  0x27   :  { %502 = vmatpush2.bf16.msra.mxu0 %v1247_v41  ;;  %543 = vmatpush2.bf16.msra.mxu1 %v1248_v42  ;;  %v107_v41 = vsub.s32 0, %v1534_v45  ;;  %v111_v42 = vsub.s32 1, %v1534_v45 }
  0x28   :  { %503 = vmatprep.subr.bf16.mxu0 %v1249_v43  ;;  %544 = vmatprep.subr.bf16.mxu1 %v1251_v44  ;;  %v1355_v43 = vmov 1983009808  }
  0x29   :  { %v574_v44 = vunpack.c.l.s4 %v1355_v43 }
  0x2b   :  { %504 = vmatpush2.bf16.msra.mxu0 %v1253_v47  ;;  %545 = vmatpush2.bf16.msra.mxu1 %v1254_v48  ;;  %v119_v47 = vsub.s32 3, %v1534_v45  ;;  %v116_v48 = vrot.slane %v103_v46, %v115_v40 }
  0x2c   :  { %505 = vmatprep.subr.bf16.mxu0 %v1255_v49  ;;  %546 = vmatprep.subr.bf16.mxu1 %v1257_v50  ;;  %v108_v49 = vrot.slane %v103_v46, %v107_v41  ;;  %v112_v50 = vrot.slane %v103_v46, %v111_v42 }
  0x2f   :  { %506 = vmatpush2.bf16.msra.mxu0 %v1259_v51  ;;  %547 = vmatpush2.bf16.msra.mxu1 %v1260_v53  ;;  %v575_v51 = vunpack.c.0.s8 %v574_v44 }
  0x30   :  { %507 = vmatprep.subr.bf16.mxu0 %v1261_v54  ;;  %548 = vmatprep.subr.bf16.mxu1 %v1263_v60  ;;  %v120_v54 = vrot.slane %v103_v46, %v119_v47 }
  0x33   :  { %508 = vmatpush2.bf16.msra.mxu0 %v1265_v62  ;;  %549 = vmatpush2.bf16.msra.mxu1 %v1266_v0  ;;  %v578_v62 = vsub.s32 %v575_v51, %v1534_v45  ;;  %v32_v0 = vld [vmem:[%s1745_s0 + $0x2] sm:$0x3]  ;;  %v1307_v51 = vld [vmem:[%s1750_s5 + $0x8] sm:$0xff]  }
  0x34   :  { %509 = vmatprep.subr.bf16.mxu0 %v1267_v2  ;;  %550 = vmatprep.subr.bf16.mxu1 %v1269_v3 }
  0x37   :  { %510 = vmatpush2.bf16.msra.mxu0 %v1271_v5  ;;  %551 = vmatpush2.bf16.msra.mxu1 %v1272_v6  ;;  %v567_v5 = vunpack.c.l.bf16 %v33_v58 }
  0x38   :  { %511 = vmatprep.subr.bf16.mxu0 %v1273_v7  ;;  %552 = vmatprep.subr.bf16.mxu1 %v1275_v9 }
  0x3b   :  { %512 = vmatpush2.bf16.msra.mxu0 %v1277_v10  ;;  %553 = vmatpush2.bf16.msra.mxu1 %v1278_v11 }
  0x3c   :  { %513 = vmatprep.subr.bf16.mxu0 %v1279_v12  ;;  %554 = vmatprep.subr.bf16.mxu1 %v1281_v13  ;;  %v566_v12 = vunpack.c.l.bf16 %v32_v0  ;;  %v568_v13 = vunpack.c.l.bf16 %v34_v1 }
  0x3f   :  { %514 = vmatpush2.bf16.msra.mxu0 %v1283_v14  ;;  %555 = vmatpush2.bf16.msra.mxu1 %v1284_v15 }
  0x40   :  { %1128 = vmatprep.subr.bf16.mxu0 %v1285_v17  ;;  %1159 = vmatprep.subr.bf16.mxu1 %v1354_v35 }
  0x42   :  { %516 = vmatmul.mubr.bf16.vlgmr.msra.gmra.mxu0 %v153_v18  ;;  %557 = vmatmul.mubr.bf16.vlgmr.msra.gmra.mxu1 %v153_v18 }
  0x43   :  { %1129 = vmatpush3.bf16.msra.mxu0 %v1286_v19  ;;  %1160 = vmatpush3.bf16.msra.mxu1 %v1301_v34 }
  0x44   :  { %1130 = vmatprep.subr.bf16.mxu0 %v1287_v20  ;;  %1161 = vmatprep.subr.bf16.mxu1 %v1354_v35 }
  0x45   :  { %1175 = vmatprep.mubr.msk.bf16.mxu1 %vm1356_vm0, %v1354_v35 }
  0x47   :  { %1131 = vmatpush3.bf16.msra.mxu0 %v1288_v21  ;;  %1162 = vmatpush3.bf16.msra.mxu1 %v1302_v36 }
  0x48   :  { %1132 = vmatprep.subr.bf16.mxu0 %v1289_v22  ;;  %1163 = vmatprep.subr.bf16.mxu1 %v1354_v35 }
  0x4b   :  { %1133 = vmatpush3.bf16.msra.mxu0 %v1290_v23  ;;  %1164 = vmatpush3.bf16.msra.mxu1 %v1303_v37 }
  0x4c   :  { %1134 = vmatprep.subr.bf16.mxu0 %v1291_v24  ;;  %1165 = vmatprep.subr.bf16.mxu1 %v1354_v35 }
  0x4f   :  { %1135 = vmatpush3.bf16.msra.mxu0 %v1292_v25  ;;  %1166 = vmatpush3.bf16.msra.mxu1 %v1304_v38 }
  0x50   :  { %1136 = vmatprep.subr.bf16.mxu0 %v1293_v26  ;;  %1167 = vmatprep.subr.bf16.mxu1 %v1354_v35 }
  0x53   :  { %1137 = vmatpush3.bf16.msra.mxu0 %v1294_v27  ;;  %1168 = vmatpush3.bf16.msra.mxu1 %v1305_v39 }
  0x54   :  { %1138 = vmatprep.subr.bf16.mxu0 %v1295_v28  ;;  %1169 = vmatprep.subr.bf16.mxu1 %v1354_v35 }
  0x57   :  { %1139 = vmatpush3.bf16.msra.mxu0 %v1296_v29 }
  0x58   :  { %1140 = vmatprep.subr.bf16.mxu0 %v1297_v30 }
  0x5b   :  { %1141 = vmatpush3.bf16.msra.mxu0 %v1298_v31 }
  0x5c   :  { %1142 = vmatprep.subr.bf16.mxu0 %v1299_v32 }
  0x5f   :  { %1143 = vmatpush3.bf16.msra.mxu0 %v1300_v33 }
 0x102   :  { %v517_v53 = vpop.f32.mrf.mxu0  ;;  %v558_v55 = vpop.f32.mrf.mxu1 }
 0x103   :  { %v559_v56 = vadd.f32 %v558_v55, %v116_v48  ;;  %v518_v60 = vadd.f32 %v517_v53, %v108_v49  ;;  %v1308_v53 = vld [vmem:[%s1750_s5] sm:$0xff]  }
 0x104   :  { %v519_v59 = vpop.f32.mrf.mxu0  ;;  %v560_v63 = vpop.f32.mrf.mxu1 }
 0x105   :  { %v520_v61 = vadd.f32 %v519_v59, %v112_v50  ;;  %v561_v2 = vadd.f32 %v560_v63, %v120_v54  ;;  %v1306_v50 = vld [vmem:[%s1750_s5 + $0x10] sm:$0xff]   ;;  %v625_v54 = vld [vmem:[%s1751_s6] sm:$0x3] }
 0x106   :  { %v521_v3 = vpop.f32.mrf.mxu0  ;;  %v562_v8 = vpop.f32.mrf.mxu1  ;;  %1170 = vmatpush3.bf16.msra.mxu1 %v1306_v50  ;;  %v845_v0 = vrot.slane %v625_v54, %v111_v42 }
 0x107   :  { %v571_v6 = vcombine.low %v518_v60, %v520_v61  ;;  %v572_v7 = vcombine.high %v518_v60, %v520_v61  ;;  %v599_v9 = vcombine.low %v559_v56, %v561_v2  ;;  %v600_v10 = vcombine.high %v559_v56, %v561_v2  ;;  %1171 = vmatprep.subr.bf16.mxu1 %v1354_v35 }
 0x108   :  { %v522_v11 = vpop.f32.mrf.mxu0  ;;  %v563_v16 = vpop.f32.mrf.mxu1  ;;  %v687_v56 = vrot.slane %v625_v54, %v107_v41 }
 0x109   :  { %v579_v14 = vrot.slane %v571_v6, %v578_v62  ;;  %v586_v15 = vrot.slane %v572_v7, %v578_v62  ;;  %v607_v17 = vrot.slane %v599_v9, %v578_v62  ;;  %v614_v18 = vrot.slane %v600_v10, %v578_v62 }
 0x10a   :  { %1172 = vmatpush3.bf16.msra.mxu1 %v1307_v51 }
 0x10b   :  { %v587_v19 = vcombine.high %v579_v14, %v579_v14  ;;  %v588_v20 = vcombine.high %v586_v15, %v586_v15  ;;  %v593_v21 = vmul.f32 %v579_v14, %v565_v4  ;;  %v595_v22 = vmul.f32 %v586_v15, %v567_v5  ;;  %1173 = vmatprep.subr.bf16.mxu1 %v1354_v35 }
 0x10c   :  { %v615_v25 = vcombine.high %v607_v17, %v607_v17  ;;  %v616_v26 = vcombine.high %v614_v18, %v614_v18 }
 0x10d   :  { %v594_v23 = vmul.f32 %v587_v19, %v566_v12  ;;  %v596_v24 = vmul.f32 %v588_v20, %v568_v13  ;;  %v621_v27 = vadd.f32 %v607_v17, %v593_v21  ;;  %v623_v29 = vadd.f32 %v614_v18, %v595_v22 }
 0x10e   :  { %1174 = vmatpush3.bf16.msra.mxu1 %v1308_v53 }
 0x10f   :  { %v622_v28 = vadd.f32 %v615_v25, %v594_v23  ;;  %v624_v30 = vadd.f32 %v616_v26, %v596_v24 }
 0x111   :  { %v630_v31 = vcombine.low %v621_v27, %v622_v28  ;;  %v631_v32 = vcombine.low %v623_v29, %v624_v30 }
 0x113   :  { %v638_v33 = vrot.slane %v630_v31, %v578_v62  ;;  %v645_v34 = vrot.slane %v631_v32, %v578_v62 }
 0x115   :  { %v646_v36 = vcombine.low %v638_v33, %v645_v34  ;;  %v647_v37 = vcombine.high %v638_v33, %v645_v34 }
 0x117   :  { %v651_v38 = vpack.c.bf16 %v647_v37, %v647_v37  ;;  %v1123_v39 = vpack.c.bf16 %v647_v37, %v646_v36  ;;  %v650_v40 = vpack.c.bf16 %v646_v36, %v646_v36 }
 0x119   :  { %816 = vmatprep.mubr.bf16.mxu0 %v651_v38  ;;  %v943_v43 = vrot.slane %v1123_v39, %v1552_v52 }
 0x11a   :  { %817 = vmatmul.mubr.bf16.vlgmr.msra.gmra.mxu0 %v650_v40 }
 0x11b   :  { %v944_v44 = vcombine.high %v943_v43, %v943_v43  ;;  %v951_v46 = vrot.slane %v943_v43, %v1552_v52  ;;  %1124 = vst.sshfl [vmem:[#allocation2] sm:$0x5 pattern:$0x73625140] %v943_v43 }
 0x11d   :  { %v958_v47 = vrot.slane %v944_v44, %v1552_v52  ;;  %v959_v48 = vcombine.high %v951_v46, %v951_v46  ;;  %1125 = vst.sshfl [vmem:[#allocation2 + $0x2] sm:$0x5 pattern:$0x73625140] %v944_v44 }
 0x11f   :  { %v960_v49 = vcombine.high %v958_v47, %v958_v47  ;;  %967 = vst [vmem:[#allocation2 + $0x4] sm:$0x3] %v959_v48 }
 0x121   :  { %968 = vst [vmem:[#allocation2 + $0x6] sm:$0x3] %v960_v49 }
 0x1da   :  { %v1144_v55 = vpop.f32.mrf.mxu0 }
 0x1dc   :  { %v1145_v57 = vpop.f32.mrf.mxu0 }
 0x1dd   :  { %v1146_v58 = vadd.f32 %v1145_v57, %v1144_v55 }
 0x1de   :  { %v1147_v59 = vpop.f32.mrf.mxu0 }
 0x1df   :  { %v819_v60 = vadd.f32 %v1146_v58, %v687_v56 }
 0x1e0   :  { %v1148_v61 = vpop.f32.mrf.mxu0 }
 0x1e1   :  { %v824_v62 = vmax.f32 %v819_v60, 0.0 }
 0x1e3   :  { %v825_v63 = vpack.c.bf16 %v824_v62, %v824_v62 }
 0x1e5   :  { %1176 = vmatmul.mubr.bf16.vlgmr.msra.gmra.mxu1 %v825_v63 }
 0x2a5   :  { %v928_v35 = vpop.f32.mrf.mxu1 }
 0x2a6   :  { %v929_v1 = vadd.f32 %v928_v35, %v845_v0 }
 0x2a7   :  { %v1177_v2 = vpop.f32.mrf.mxu1 }
 0x2a8   :  { %v969_v3 = vpack.c.bf16 %v929_v1, %v929_v1 }
 0x2a9   :  { %v931_v4 = vpop.f32.mrf.mxu1 }
 0x2aa   :  { %v977_v5 = vrot.slane %v969_v3, %v1552_v52 }
 0x2ab   :  { %v1178_v6 = vpop.f32.mrf.mxu1 }
 0x2ac   :  { %v978_v41 = vcombine.high %v977_v5, %v977_v5  ;;  %v985_v7 = vrot.slane %v977_v5, %v1552_v52  ;;  %1126 = vst.sshfl [vmem:[#allocation4] sm:$0x1 pattern:$0x73625140] %v977_v5 }
 0x2ae   :  { %v992_v8 = vrot.slane %v978_v41, %v1552_v52  ;;  %v993_v9 = vcombine.high %v985_v7, %v985_v7  ;;  %1127 = vst.sshfl [vmem:[#allocation4 + $0x1] sm:$0x1 pattern:$0x73625140] %v978_v41 }
 0x2b0   :  { %v994_v10 = vcombine.high %v992_v8, %v992_v8  ;;  %1001 = vst [vmem:[#allocation4 + $0x2] sm:$0x1] %v993_v9 }
 0x2b2   :  { %1002 = vst [vmem:[#allocation4 + $0x3] sm:$0x1] %v994_v10 }
 0x2b3   :  { %1007 = vsyncadd [#allocation3], 96  ;;  %s1357_s5 = smov [#allocation2]  }
 0x2b4   :  { %s1008_s6 = sshll.u32 %s1357_s5, 4  ;;  %s1009_s6 = int_to_ptr.vmem [resolvable:$true] %s1008_s6 }
 0x2b5   :  { %s1309_s15 = scalar_lea.vmem %s1009_s6, 32  ;;  %s1313_s16 = scalar_lea.vmem %s1009_s6, 128 }
 0x2b6   :  { %p1310_p0 = scmp.ne.s32.totalorder %s1009_s6, %s1309_s15  ;;  %p1314_p1 = scmp.lt.s32.totalorder %s1009_s6, %s1009_s6 }
 0x2b7   :  { %p1315_p2 = scmp.lt.s32.totalorder %s1313_s16, %s1309_s15 }
 0x2b9   :  { %p1316_p3 = por %p1315_p2, %p1314_p1 }
 0x2bb   :  { %p1317_p4 = pnand %p1316_p3, %p1310_p0 }
 0x2bd   :  { %1320 = shalt.err (!%p1317_p4)
}
 0x2be   :  { %s1358_s17 = smov 32   ;;  %s1359_s18 = smov 2  }
 0x2bf   :  { %1014 = dma.vmem_to_hbm [thread:$0]  %s1009_s6, 32, %s1752_s7, [#allocation3], %s1358_s17, %s1358_s17, %s1359_s18  }
 0x2c0   :  { %1019 = vsyncadd [#allocation5], 48  ;;  %s1360_s20 = smov [#allocation4]  }
 0x2c1   :  { %s1020_s21 = sshll.u32 %s1360_s20, 4  ;;  %s1021_s21 = int_to_ptr.vmem [resolvable:$true] %s1020_s21 }
 0x2c2   :  { %s1329_s22 = scalar_lea.vmem %s1021_s21, 16  ;;  %s1333_s23 = scalar_lea.vmem %s1021_s21, 64 }
 0x2c3   :  { %p1330_p5 = scmp.ne.s32.totalorder %s1021_s21, %s1329_s22  ;;  %p1334_p6 = scmp.lt.s32.totalorder %s1021_s21, %s1021_s21 }
 0x2c4   :  { %p1335_p7 = scmp.lt.s32.totalorder %s1333_s23, %s1329_s22 }
 0x2c6   :  { %p1336_p8 = por %p1335_p7, %p1334_p6 }
 0x2c8   :  { %p1337_p9 = pnand %p1336_p8, %p1330_p5 }
 0x2ca   :  { %1340 = shalt.err (!%p1337_p9)
}
 0x2cb   :  { %s1361_s24 = smov 16   ;;  %s1362_s25 = smov 1  }
 0x2cc   :  { %1026 = dma.vmem_to_hbm [thread:$0]  %s1021_s21, 16, %s1753_s8, [#allocation5], %s1361_s24, %s1361_s24, %s1362_s25  }
 0x2cd   :  { %1349 = dma.done.wait [#allocation3], 128  }
 0x2ce   :  { %1350 = vsyncadd [#allocation3], 4294967168 }
 0x2cf   :  { %1351 = dma.done.wait [#allocation5], 64  }
 0x2d0   :  { %1352 = vsyncadd [#allocation5], 4294967232 }
 0x2d1   :  { %1033 = vsyncpa [#allocation3], 1 }
 0x2d2   :  { %1034 = vsyncpa [#allocation5], 1 }

</bundles_post_ra>
